<compile_context>
chip_gen: v7x
topology: tpu7x:2x2x1
jax: 0.10.0
libtpu: 0.0.40
codegen_flags: <defaults>
</compile_context>

<pallas_src>
import jax
import jax.numpy as jnp
from jax.experimental import pallas as pl
from jax.experimental.pallas import tpu as pltpu


def _linear_kernel(x_ref, w_ref, b_ref, o_ref):
    # Blocks: x -> (TM, D_in), w -> (D_in, D_out), b -> (1, D_out), out -> (TM, D_out).
    # Cast after the load so HBM traffic stays in the caller's dtype (bf16-friendly),
    # while the compute + accumulate run in f32 (required on v5e, cheap everywhere).
    x = x_ref[...].astype(jnp.float32)
    w = w_ref[...].astype(jnp.float32)
    b = b_ref[...].astype(jnp.float32)
    y = jnp.dot(x, w, preferred_element_type=jnp.float32) + b
    o_ref[...] = y.astype(o_ref.dtype)


def _pick_row_tile(m_rows, d_in, d_out, itemsize):
    """Largest power-of-two row tile (>=8) whose double-buffered x+out tiles stay
    within a ~4 MiB budget -- safe on v5e (16 MiB scoped default), v6e and v7x."""
    budget = 4 * 1024 * 1024
    per_row = (d_in + d_out) * itemsize
    tm = 8
    while tm * 2 <= 1024 and 2 * (tm * 2) * per_row <= budget:
        tm *= 2
    m_rounded = ((m_rows + 7) // 8) * 8
    return max(8, min(tm, m_rounded))


def _linear_pallas(x2, weight, bias):
    """x2: (M, D_in); weight: (D_out, D_in); bias: (D_out,) -> (M, D_out)."""
    m, d_in = x2.shape
    d_out = weight.shape[0]
    out_dtype = x2.dtype

    tm = _pick_row_tile(m, d_in, d_out, jnp.dtype(x2.dtype).itemsize)
    m_pad = pl.cdiv(m, tm) * tm
    if m_pad != m:
        # Pad the tail block with zero rows; sliced off after the call.
        x2 = jnp.pad(x2, ((0, m_pad - m), (0, 0)))

    w_t = weight.T                 # (D_in, D_out): contraction dim leads, lane dim = D_out
    b2 = bias.reshape(1, d_out)

    y = pl.pallas_call(
        _linear_kernel,
        out_shape=jax.ShapeDtypeStruct((m_pad, d_out), out_dtype),
        grid_spec=pl.GridSpec(
            grid=(m_pad // tm,),
            in_specs=[
                pl.BlockSpec((tm, d_in), lambda i: (i, 0)),      # activations (tiled rows)
                pl.BlockSpec((d_in, d_out), lambda i: (0, 0)),   # weight (resident)
                pl.BlockSpec((1, d_out), lambda i: (0, 0)),      # bias (resident)
            ],
            out_specs=pl.BlockSpec((tm, d_out), lambda i: (i, 0)),
        ),
        compiler_params=pltpu.CompilerParams(
            dimension_semantics=("parallel",),   # row-tile axis shards across v7x's 2 TCs
            vmem_limit_bytes=32 << 20,           # valid headroom on v5e/v6e/v7x
        ),
    )(x2, w_t, b2)

    return y[:m] if m_pad != m else y


def time_distributed(x, weight, bias, batch_first=False):
    """Pallas equivalent of TimeDistributed(nn.Linear(D_in, D_out)).forward(x)."""
    d_out = weight.shape[0]
    if x.ndim <= 2:
        # `return self.module(x)` branch.
        x2 = x if x.ndim == 2 else x.reshape(1, -1)
        y = _linear_pallas(x2, weight, bias)
        return y if x.ndim == 2 else y[0]
    # x.contiguous().view(-1, x.size(-1))
    x2 = x.reshape(-1, x.shape[-1])
    y2 = _linear_pallas(x2, weight, bias)
    if batch_first:
        return y2.reshape(x.shape[0], -1, d_out)   # y.view(x.size(0), -1, y.size(-1))
    return y2.reshape(-1, x.shape[1], d_out)       # y.view(-1, x.size(1), y.size(-1))


def reference_time_distributed(x, weight, bias, batch_first=False):
    d_out = weight.shape[0]
    if x.ndim <= 2:
        return x @ weight.T + bias
    x2 = x.reshape(-1, x.shape[-1])
    y2 = x2 @ weight.T + bias
    if batch_first:
        return y2.reshape(x.shape[0], -1, d_out)
    return y2.reshape(-1, x.shape[1], d_out)


if __name__ == "__main__":
    key = jax.random.PRNGKey(0)
    kx, kw, kb = jax.random.split(key, 3)

    # batch=2, seq=8, hidden=32 -> TimeDistributed(nn.Linear(32, 16))
    B, T, D_IN, D_OUT = 2, 8, 32, 16
    bound = 1.0 / (D_IN ** 0.5)
    weight = jax.random.uniform(kw, (D_OUT, D_IN), jnp.float32, -bound, bound)
    bias = jax.random.uniform(kb, (D_OUT,), jnp.float32, -bound, bound)
    x = jax.random.normal(kx, (B, T, D_IN), jnp.float32)

    out_bf = time_distributed(x, weight, bias, batch_first=True)    # (B, T, D_OUT)
    out_tf = time_distributed(x, weight, bias, batch_first=False)   # (-1, T, D_OUT)
    out_2d = time_distributed(x[0], weight, bias)                   # <=2-dim fast path
    out_bf, out_tf, out_2d = jax.block_until_ready((out_bf, out_tf, out_2d))

    ref_bf = reference_time_distributed(x, weight, bias, batch_first=True)
    ref_tf = reference_time_distributed(x, weight, bias, batch_first=False)
    ref_2d = reference_time_distributed(x[0], weight, bias)

    assert out_bf.shape == (B, T, D_OUT)
    assert out_tf.shape == (B, T, D_OUT)
    assert out_2d.shape == (T, D_OUT)
    for got, ref in ((out_bf, ref_bf), (out_tf, ref_tf), (out_2d, ref_2d)):
        assert jnp.allclose(got, ref, atol=1e-4, rtol=1e-4), "mismatch vs reference"

    print("KERNEL_OK")
</pallas_src>

<mosaic_0001>
module attributes {stable_mosaic.version = 11 : i64} {
  func.func @_linear_kernel(%arg0: i32, %arg1: memref<16x32xf32, #tpu.memory_space<vmem>>, %arg2: memref<32x16xf32, #tpu.memory_space<vmem>>, %arg3: memref<1x16xf32, #tpu.memory_space<vmem>>, %arg4: memref<16x16xf32, #tpu.memory_space<vmem>>) attributes {dimension_semantics = [#tpu.dimension_semantics<parallel>], iteration_bounds = array<i64: 1>, scalar_prefetch = 0 : i64, scratch_operands = 0 : i64, tpu.core_type = #tpu.core_type<tc>, window_params = [{transform_indices = @transform_0, window_bounds = array<i64: 16, 32>}, {pipeline_mode = #tpu.pipeline_mode<synchronous>, transform_indices = @transform_1, window_bounds = array<i64: 32, 16>}, {pipeline_mode = #tpu.pipeline_mode<synchronous>, transform_indices = @transform_2, window_bounds = array<i64: 1, 16>}, {transform_indices = @transform_3, window_bounds = array<i64: 16, 16>}]} {
    %c0 = arith.constant 0 : index
    %c0_0 = arith.constant 0 : index
    %0 = vector.load %arg1[%c0, %c0_0] : memref<16x32xf32, #tpu.memory_space<vmem>>, vector<16x32xf32>
    %c0_1 = arith.constant 0 : index
    %c0_2 = arith.constant 0 : index
    %1 = vector.load %arg2[%c0_1, %c0_2] : memref<32x16xf32, #tpu.memory_space<vmem>>, vector<32x16xf32>
    %c0_3 = arith.constant 0 : index
    %c0_4 = arith.constant 0 : index
    %2 = vector.load %arg3[%c0_3, %c0_4] : memref<1x16xf32, #tpu.memory_space<vmem>>, vector<1x16xf32>
    %cst = arith.constant dense<0.000000e+00> : vector<16x16xf32>
    %3 = tpu.matmul %0, %1, %cst {dimension_numbers = #tpu.dot_dimension_numbers<[1], [0], [0], [1], [0, 0, 1, 1], [], []>} : vector<16x32xf32>, vector<32x16xf32>, vector<16x16xf32> -> vector<16x16xf32>
    %4 = vector.broadcast %2 : vector<1x16xf32> to vector<16x16xf32>
    %5 = arith.addf %3, %4 : vector<16x16xf32>
    %c0_5 = arith.constant 0 : index
    %c0_6 = arith.constant 0 : index
    %6 = vector.load %arg4[%c0_5, %c0_6] : memref<16x16xf32, #tpu.memory_space<vmem>>, vector<16x16xf32>
    tpu.vector_store %arg4[%c0_5, %c0_6], %5 {strides = array<i32>} : memref<16x16xf32, #tpu.memory_space<vmem>>, vector<16x16xf32>,
    return
  }
  func.func @transform_0(%arg0: i32) -> (i32, i32) {
    %c0_i32 = arith.constant 0 : i32
    %c0_i32_0 = arith.constant 0 : i32
    return %arg0, %c0_i32 : i32, i32
  }
  func.func @transform_1(%arg0: i32) -> (i32, i32) {
    %c0_i32 = arith.constant 0 : i32
    %c0_i32_0 = arith.constant 0 : i32
    %c0_i32_1 = arith.constant 0 : i32
    return %c0_i32, %c0_i32_0 : i32, i32
  }
  func.func @transform_2(%arg0: i32) -> (i32, i32) {
    %c0_i32 = arith.constant 0 : i32
    %c0_i32_0 = arith.constant 0 : i32
    %c0_i32_1 = arith.constant 0 : i32
    return %c0_i32, %c0_i32_0 : i32, i32
  }
  func.func @transform_3(%arg0: i32) -> (i32, i32) {
    %c0_i32 = arith.constant 0 : i32
    %c0_i32_0 = arith.constant 0 : i32
    return %arg0, %c0_i32 : i32, i32
  }
}

</mosaic_0001>

<bundles_post_ra>
// kernel: tpu_custom_call.1
= control target key start
LH: loop header
LB: loop body
LE: loop exit
PB: predicated region body
PF: predicated region fallthrough
CT: control target
= control target key end

     0   :  { %vm28_vm0 = vcmask 261120   ;;  %s240_s0 = inlined_call_operand.vmem [shape: f32[16,32], index: 0, kind: input, shape index: {}]   ;;  %s241_s1 = inlined_call_operand.vmem [shape: f32[32,16], index: 1, kind: input, shape index: {}]   ;;  %s242_s2 = inlined_call_operand.vmem [shape: f32[1,16], index: 2, kind: input, shape index: {}]   ;;  %s243_s3 = inlined_call_operand.hbm [shape: f32[16,16], index: 3, kind: output, shape index: {}]  }
   0x1   :  { %v17_v0 = vld [vmem:[%s241_s1] sm:$0xff]  ;;  %v18_v1 = vld [vmem:[%s241_s1 + $0x8] sm:$0xff]  ;;  %v19_v2 = vld [vmem:[%s241_s1 + $0x10] sm:$0xff] }
   0x2   :  { %v149_v3 = vpack.c.bf16 %v18_v1, %v17_v0  ;;  %v20_v4 = vld [vmem:[%s241_s1 + $0x18] sm:$0xff]  ;;  %v15_v5 = vld [vmem:[%s240_s0] sm:$0xff] }
   0x3   :  { %v153_v6 = vpack.c.bf16 %v20_v4, %v19_v2  ;;  %146 = vmatprep.mubr.msk.f32.mxu0 %vm28_vm0, %v15_v5 }
   0x4   :  { %8 = vsyncpa [#allocation3], 0  ;;  %150 = vmatprep.subr.bf16.mxu0 %v149_v3  ;;  %v16_v7 = vld [vmem:[%s240_s0 + $0x8] sm:$0xff]  ;;  %v129_v8 = vld [vmem:[%s242_s2] ss:$0 sm:$0xff]  ;;  %s184_s1 = smov [#allocation2]  }
   0x5   :  { %152 = vmatpush3.bf16.msra.mxu0 %v149_v3  ;;  %s118_s26 = sshll.u32 %s184_s1, 4  ;;  %vm110_vm1 = vcmask 130048   ;;  %s119_s26 = int_to_ptr.vmem [resolvable:$true] %s118_s26 }
   0x6   :  { %154 = vmatprep.subr.bf16.mxu0 %v153_v6  ;;  %s160_s27 = scalar_lea.vmem %s119_s26, 256  ;;  %p165_p1 = scmp.lt.s32.totalorder %s119_s26, %s119_s26 }
   0x7   :  { %p161_p0 = scmp.ne.s32.totalorder %s119_s26, %s160_s27  ;;  %p166_p2 = scmp.lt.s32.totalorder %s160_s27, %s160_s27 }
   0x9   :  { %156 = vmatpush3.bf16.msra.mxu0 %v153_v6  ;;  %p167_p3 = por %p166_p2, %p165_p1 }
   0xb   :  { %p168_p4 = pnand %p167_p3, %p161_p0 }
   0xc   :  { %147 = vmatmul.mubr.msk.f32.vlgmr.msra.gmra.mrb[0].mxu0 %vm28_vm0, %v16_v7 }
  0xdf   :  { %v148_v9 = vpop.f32.mrb[0].mxu0 }
  0xe0   :  { %v107_v10 = vadd.f32 %v148_v9, %v129_v8  ;;  %v101_v11 = vpop.f32.mrb[1].mxu0 }
  0xe1   :  { %v102_v12 = vadd.f32 %v129_v8, %v101_v11 }
  0xe2   :  { %112 = vst.msk [vmem:[#allocation2 + $0x8] sm:$0xff] %vm110_vm1, %v107_v10 }
  0xe3   :  { %111 = vst.msk [vmem:[#allocation2] sm:$0xff] %vm110_vm1, %v102_v12 }
  0xe4   :  { %171 = shalt.err (!%p168_p4)
}
  0xe5   :  { %s172_s2 = scalar_lea.hbm %s243_s3, 256 }
  0xe6   :  { %p173_p5 = scmp.ne.s32.totalorder %s243_s3, %s172_s2  ;;  %p176_p6 = scmp.lt.u32.totalorder %s172_s2, %s243_s3 }
  0xe8   :  { %p178_p7 = pnand %p176_p6, %p173_p5 }
  0xea   :  { %181 = shalt.err (!%p178_p7)
}
  0xeb   :  { %s185_s6 = smov 128   ;;  %s186_s7 = smov 8  }
  0xec   :  { %124 = dma.vmem_to_hbm [thread:$0]  %s119_s26, 256, %s243_s3, [#allocation3], %s185_s6, %s185_s6, %s186_s7  }
  0xed   :  { %182 = dma.done.wait [#allocation3], 256  }
  0xee   :  { %183 = vsyncadd [#allocation3], 4294967040 }
  0xef   :  { %128 = vsyncpa [#allocation3], 1 }

</bundles_post_ra>
